<compile_context>
chip_gen: v7x
topology: tpu7x:2x2x1
jax: 0.10.0
libtpu: 0.0.40
codegen_flags: <defaults>
</compile_context>

<pallas_src>
import functools

import jax
import jax.numpy as jnp
from jax import lax
from jax.experimental import pallas as pl
from jax.experimental.pallas import tpu as pltpu


# TODO(synk): `linear` is undefined in the reference source; assuming identity.
def _linear(x):
    return float(x)


# ---------------------------------------------------------------------------
# Kernel: per-row cross-entropy NLL, batch-tiled (parallel) x class-tiled
# (arbitrary, online logsumexp).
# ---------------------------------------------------------------------------
def _ce_rows_kernel(logits_ref, target_ref, nll_ref, *scratch,
                    n_total, c_total, block_n, block_c, num_c_tiles):
    i = pl.program_id(0)          # batch tile ("parallel")
    k = pl.program_id(1)          # class tile ("arbitrary", innermost)

    tile = logits_ref[...].astype(jnp.float32)          # (tn, tc), cast per tile
    tn, tc = tile.shape
    tgt = target_ref[...]                               # (tn, 1) int32
    col = k * block_c + lax.broadcasted_iota(jnp.int32, (tn, tc), 1)

    def _finalize(nll_rows):
        # Ragged last batch tile: SELECT (not multiply) so NaN/Inf in the
        # block padding cannot leak into the result rows.
        row = lax.broadcasted_iota(jnp.int32, (tn, 1), 0)
        valid = (i * block_n + row) < n_total
        nll_ref[...] = jnp.where(valid, nll_rows, 0.0)

    if num_c_tiles == 1:
        # --- small-C fast path: no online carry, no scratch traffic ---
        m = jnp.max(tile, axis=-1, keepdims=True)
        shifted = tile - m
        sum_e = jnp.sum(jnp.exp(shifted), axis=-1, keepdims=True)
        picked = jnp.sum(jnp.where(col == tgt, shifted, 0.0),
                         axis=-1, keepdims=True)
        _finalize(jnp.log(sum_e) - picked)
    else:
        # --- large-C path: online logsumexp across class tiles ---
        m_ref, l_ref, pick_ref = scratch

        if c_total % block_c != 0:
            # Mask padded class columns of the ragged last class tile.
            tile = jnp.where(col < c_total, tile, -jnp.inf)

        @pl.when(k == 0)
        def _():
            m_ref[...] = jnp.full_like(m_ref, -jnp.inf)
            l_ref[...] = jnp.zeros_like(l_ref)
            pick_ref[...] = jnp.zeros_like(pick_ref)

        m_prev = m_ref[...]
        m_new = jnp.maximum(m_prev, jnp.max(tile, axis=-1, keepdims=True))
        l_ref[...] = (l_ref[...] * jnp.exp(m_prev - m_new)
                      + jnp.sum(jnp.exp(tile - m_new), axis=-1, keepdims=True))
        pick_ref[...] += jnp.sum(jnp.where(col == tgt, tile, 0.0),
                                 axis=-1, keepdims=True)
        m_ref[...] = m_new

        @pl.when(k == num_c_tiles - 1)
        def _():
            _finalize(m_ref[...] + jnp.log(l_ref[...]) - pick_ref[...])


def _choose_tiles(n, c, itemsize):
    """Byte-budget-driven tile selection (per perf review)."""
    # Class tile: full C when modest, else a lane-dense 2048-wide slab.
    MAX_BLOCK_C = 2048
    block_c = c if c <= MAX_BLOCK_C else MAX_BLOCK_C

    # Batch tile: ~2 MiB of logits per buffer (double-buffered by Pallas),
    # rounded down to a multiple of 8 sublanes; full N if N is smaller.
    TARGET_TILE_BYTES = 2 * 1024 * 1024
    rows = max(8, TARGET_TILE_BYTES // (block_c * itemsize))
    rows = int(rows) - int(rows) % 8
    if rows >= n:
        return n, block_c
    return rows, block_c


def _cross_entropy_rows(logits, target, block_n=None, block_c=None):
    """Per-row NLL of CrossEntropyLoss(logits, target), shape (N,) float32."""
    n, c = logits.shape
    itemsize = jnp.dtype(logits.dtype).itemsize
    tn_auto, tc_auto = _choose_tiles(n, c, itemsize)
    tn = tn_auto if block_n is None else min(block_n, n)
    tc = tc_auto if block_c is None else min(block_c, c)
    num_c_tiles = pl.cdiv(c, tc)
    grid = (pl.cdiv(n, tn), num_c_tiles)

    tgt2d = target.astype(jnp.int32).reshape(n, 1)

    kernel = functools.partial(
        _ce_rows_kernel, n_total=n, c_total=c,
        block_n=tn, block_c=tc, num_c_tiles=num_c_tiles)

    # Online-logsumexp carry (only needed when the class axis is tiled).
    scratch = ([pltpu.VMEM((tn, 1), jnp.float32)] * 3) if num_c_tiles > 1 else []

    nll = pl.pallas_call(
        kernel,
        grid=grid,
        in_specs=[
            pl.BlockSpec((tn, tc), lambda i, k: (i, k)),   # logits (native dtype)
            pl.BlockSpec((tn, 1), lambda i, k: (i, 0)),    # targets, resident over k
        ],
        out_specs=pl.BlockSpec((tn, 1), lambda i, k: (i, 0)),
        out_shape=jax.ShapeDtypeStruct((n, 1), jnp.float32),
        scratch_shapes=scratch,
        compiler_params=pltpu.CompilerParams(
            dimension_semantics=("parallel", "arbitrary"),
            vmem_limit_bytes=32 * 1024 * 1024),
    )(logits, tgt2d)
    return nll[:, 0]


def min_entropy_loss(logits, target, alpha, weight=0.1, interval=8, epoch=1,
                     block_n=None, block_c=None):
    """Wrapper mimicking minEntropyLoss.forward.

    logits: (N, C), target: (N,) int, alpha: (A, E, O) (uses alpha[0]).
    Returns (loss, -weight * normal_entropy) as scalars.
    """
    # self.update(epoch): weight = linear(epoch - interval) / 2  (overrides arg,
    # matching the PyTorch module).
    weight = _linear(epoch - interval) / 2.0

    n, _ = logits.shape

    # Heavy streaming part in Pallas; tiny reductions fuse in XLA.
    nll = _cross_entropy_rows(logits, target, block_n=block_n, block_c=block_c)
    loss1 = jnp.sum(nll) / n                              # mean reduction

    # Alpha entropy term: 6x5 elements — plain JAX per perf review (no resident
    # alpha DMA / kernel epilogue).  Algebraic log-softmax is NaN-safe.
    a = alpha[0].astype(jnp.float32)
    x = 2.0 * a
    y = jnp.where(x < -1.0, x * x * x, x)                 # streng_func
    ys = y - jnp.max(y, axis=-1, keepdims=True)
    logp = ys - jnp.log(jnp.sum(jnp.exp(ys), axis=-1, keepdims=True))
    p = jnp.exp(logp)
    neg_ent = jnp.sum(p * logp)                           # sum(p * log p)

    loss = loss1 - weight * neg_ent
    return loss, -weight * neg_ent


# ---------------------------------------------------------------------------
# Pure-JAX reference for correctness checking.
# ---------------------------------------------------------------------------
def _reference(logits, target, alpha, interval, epoch):
    w = _linear(epoch - interval) / 2.0
    n = logits.shape[0]
    lf = logits.astype(jnp.float32)
    lse = jax.scipy.special.logsumexp(lf, axis=-1)
    ce = jnp.mean(lse - lf[jnp.arange(n), target])
    x = 2.0 * alpha[0].astype(jnp.float32)
    y = jnp.where(x < -1.0, x ** 3, x)
    p = jax.nn.softmax(y, axis=-1)
    neg_ent = jnp.sum(p * jnp.log(p))
    return ce - w * neg_ent, -w * neg_ent


if __name__ == "__main__":
    key = jax.random.PRNGKey(0)
    k1, k2, k3, k4, k5, k6, k7 = jax.random.split(key, 7)

    # --- small shapes consistent with the module (NAS-Bench-201-like) ---
    N, C = 8, 10          # batch, num classes
    A, E, O = 2, 6, 5     # alpha types, edges, ops

    logits = jax.random.normal(k1, (N, C), dtype=jnp.float32)
    target = jax.random.randint(k2, (N,), 0, C, dtype=jnp.int32)
    alpha = jax.random.normal(k3, (A, E, O), dtype=jnp.float32) * 0.5

    loss, ent_term = min_entropy_loss(logits, target, alpha,
                                      weight=0.1, interval=8, epoch=1)
    jax.block_until_ready((loss, ent_term))
    loss_ref, ent_ref = _reference(logits, target, alpha, interval=8, epoch=1)
    assert jnp.allclose(loss, loss_ref, rtol=1e-5, atol=1e-5), (loss, loss_ref)
    assert jnp.allclose(ent_term, ent_ref, rtol=1e-5, atol=1e-5), (ent_term, ent_ref)

    # --- exercise the batch grid + ragged last batch tile path ---
    N2 = 300
    logits2 = jax.random.normal(k4, (N2, C), dtype=jnp.float32)
    target2 = jax.random.randint(k5, (N2,), 0, C, dtype=jnp.int32)
    loss2, ent2 = min_entropy_loss(logits2, target2, alpha,
                                   weight=0.1, interval=8, epoch=1, block_n=128)
    jax.block_until_ready((loss2, ent2))
    loss2_ref, ent2_ref = _reference(logits2, target2, alpha, interval=8, epoch=1)
    assert jnp.allclose(loss2, loss2_ref, rtol=1e-5, atol=1e-5), (loss2, loss2_ref)
    assert jnp.allclose(ent2, ent2_ref, rtol=1e-5, atol=1e-5), (ent2, ent2_ref)

    # --- exercise the class-tiled online-logsumexp path (ragged class tile) ---
    N3, C3 = 64, 300
    logits3 = jax.random.normal(k6, (N3, C3), dtype=jnp.float32)
    target3 = jax.random.randint(k7, (N3,), 0, C3, dtype=jnp.int32)
    loss3, ent3 = min_entropy_loss(logits3, target3, alpha,
                                   weight=0.1, interval=8, epoch=1,
                                   block_n=32, block_c=128)
    jax.block_until_ready((loss3, ent3))
    loss3_ref, ent3_ref = _reference(logits3, target3, alpha, interval=8, epoch=1)
    assert jnp.allclose(loss3, loss3_ref, rtol=1e-5, atol=1e-5), (loss3, loss3_ref)
    assert jnp.allclose(ent3, ent3_ref, rtol=1e-5, atol=1e-5), (ent3, ent3_ref)

    print("KERNEL_OK")
</pallas_src>

<mosaic_0001>
module attributes {stable_mosaic.version = 11 : i64} {
  func.func @_ce_rows_kernel(%arg0: i32, %arg1: i32, %arg2: memref<8x10xf32, #tpu.memory_space<vmem>>, %arg3: memref<8x1xi32, #tpu.memory_space<vmem>>, %arg4: memref<8x1xf32, #tpu.memory_space<vmem>>) attributes {dimension_semantics = [#tpu.dimension_semantics<parallel>, #tpu.dimension_semantics<arbitrary>], iteration_bounds = array<i64: 1, 1>, scalar_prefetch = 0 : i64, scratch_operands = 0 : i64, tpu.core_type = #tpu.core_type<tc>, window_params = [{transform_indices = @transform_0, window_bounds = array<i64: 8, 10>}, {transform_indices = @transform_1, window_bounds = array<i64: 8, 1>}, {transform_indices = @transform_2, window_bounds = array<i64: 8, 1>}]} {
    %c0 = arith.constant 0 : index
    %c0_0 = arith.constant 0 : index
    %0 = vector.load %arg2[%c0, %c0_0] : memref<8x10xf32, #tpu.memory_space<vmem>>, vector<8x10xf32>
    %c0_1 = arith.constant 0 : index
    %c0_2 = arith.constant 0 : index
    %1 = vector.load %arg3[%c0_1, %c0_2] : memref<8x1xi32, #tpu.memory_space<vmem>>, vector<8x1xi32>
    %c10_i32 = arith.constant 10 : i32
    %2 = arith.muli %arg1, %c10_i32 : i32
    %3 = tpu.iota {dimensions = array<i32: 1>} : vector<8x10xi32>
    %4 = vector.broadcast %2 : i32 to vector<8x10xi32>
    %5 = arith.addi %4, %3 : vector<8x10xi32>
    %cst = arith.constant dense<0xFF800000> : vector<8xf32>
    %6 = vector.multi_reduction <maximumf>, %0, %cst [1] : vector<8x10xf32> to vector<8xf32>
    %7 = vector.shape_cast %6 : vector<8xf32> to vector<8x1xf32>
    %8 = vector.broadcast %7 : vector<8x1xf32> to vector<8x10xf32>
    %9 = arith.subf %0, %8 : vector<8x10xf32>
    %10 = math.exp %9 : vector<8x10xf32>
    %cst_3 = arith.constant dense<0.000000e+00> : vector<8xf32>
    %11 = vector.multi_reduction <add>, %10, %cst_3 [1] : vector<8x10xf32> to vector<8xf32>
    %12 = vector.shape_cast %11 : vector<8xf32> to vector<8x1xf32>
    %13 = vector.broadcast %1 : vector<8x1xi32> to vector<8x10xi32>
    %14 = arith.cmpi eq, %5, %13 : vector<8x10xi32>
    %cst_4 = arith.constant 0.000000e+00 : f32
    %15 = vector.broadcast %cst_4 : f32 to vector<8x10xf32>
    %16 = arith.select %14, %9, %15 : vector<8x10xi1>, vector<8x10xf32>
    %cst_5 = arith.constant dense<0.000000e+00> : vector<8xf32>
    %17 = vector.multi_reduction <add>, %16, %cst_5 [1] : vector<8x10xf32> to vector<8xf32>
    %18 = vector.shape_cast %17 : vector<8xf32> to vector<8x1xf32>
    %19 = math.log %12 : vector<8x1xf32>
    %20 = arith.subf %19, %18 : vector<8x1xf32>
    %21 = tpu.iota {dimensions = array<i32: 0>} : vector<8x1xi32>
    %c8_i32 = arith.constant 8 : i32
    %22 = arith.muli %arg0, %c8_i32 : i32
    %23 = vector.broadcast %22 : i32 to vector<8x1xi32>
    %24 = arith.addi %23, %21 : vector<8x1xi32>
    %c8_i32_6 = arith.constant 8 : i32
    %25 = vector.broadcast %c8_i32_6 : i32 to vector<8x1xi32>
    %26 = arith.cmpi slt, %24, %25 : vector<8x1xi32>
    %cst_7 = arith.constant 0.000000e+00 : f32
    %27 = vector.broadcast %cst_7 : f32 to vector<8x1xf32>
    %28 = arith.select %26, %20, %27 : vector<8x1xi1>, vector<8x1xf32>
    %c0_8 = arith.constant 0 : index
    %c0_9 = arith.constant 0 : index
    %29 = vector.load %arg4[%c0_8, %c0_9] : memref<8x1xf32, #tpu.memory_space<vmem>>, vector<8x1xf32>
    tpu.vector_store %arg4[%c0_8, %c0_9], %28 {strides = array<i32>} : memref<8x1xf32, #tpu.memory_space<vmem>>, vector<8x1xf32>,
    return
  }
  func.func @transform_0(%arg0: i32, %arg1: i32) -> (i32, i32) {
    %c0_i32 = arith.constant 0 : i32
    return %arg0, %arg1 : i32, i32
  }
  func.func @transform_1(%arg0: i32, %arg1: i32) -> (i32, i32) {
    %c0_i32 = arith.constant 0 : i32
    %c0_i32_0 = arith.constant 0 : i32
    return %arg0, %c0_i32 : i32, i32
  }
  func.func @transform_2(%arg0: i32, %arg1: i32) -> (i32, i32) {
    %c0_i32 = arith.constant 0 : i32
    %c0_i32_0 = arith.constant 0 : i32
    return %arg0, %c0_i32 : i32, i32
  }
}

</mosaic_0001>

<bundles_post_ra>
// kernel: tpu_custom_call.1
= control target key start
LH: loop header
LB: loop body
LE: loop exit
PB: predicated region body
PF: predicated region fallthrough
CT: control target
= control target key end

     0   :  { %vm18_vm0 = vcmask 80896   ;;  %v58_v1 = vmov 0   ;;  %v14_v7 = vlaneseq  ;;  %vm46_vm2 = vcmask 7168   ;;  %s86_s0 = inlined_call_operand.vmem [shape: f32[8,10], index: 0, kind: input, shape index: {}]   ;;  %s87_s1 = inlined_call_operand.vmem [shape: s32[8,1], index: 1, kind: input, shape index: {}]   ;;  %s88_s2 = inlined_call_operand.vmem [shape: f32[8,1], index: 2, kind: output, shape index: {}]  }
   0x1   :  { %v11_v0 = vld [vmem:[%s86_s0] sm:$0xff]  ;;  %53 = vset.pattern.permute.xlu0 %v58_v1 }
   0x2   :  { %v19_v2 = vsel %vm18_vm0, %v11_v0, -inf  ;;  %v12_v3 = vld [vmem:[%s87_s1] sm:$0xff]  ;;  %v15_v8 = vand.u32 127, %v14_v7 }
   0x3   :  { %20 = vmax.xlane.f32.xlu0 %v19_v2 }
  0x19   :  { %29 = vperm.xlu0 %53, %v12_v3  }
  0x90   :  { %v21_v4 = vpop.xlane.xlu0 %20 }
  0x91   :  { %v22_v5 = vsub.f32 %v11_v0, %v21_v4 }
  0x93   :  { %v23_v6 = vmul.f32 1.442695, %v22_v5 }
  0x95   :  { %54 = vpow2.f32 %v23_v6 }
  0x98   :  { %v30_v9 = vpop.permute.xlu0 %29 }
  0x99   :  { %vm31_vm1 = vcmp.eq.s32.totalorder %v15_v8, %v30_v9 }
  0x9a   :  { %v32_v12 = vsel %vm31_vm1, %v22_v5, 0.0 }
  0x9b   :  { %v33_v13 = vsel %vm18_vm0, %v32_v12, 0.0 }
  0x9f   :  { %v55_v10 = vpop.eup %54 }
  0xa0   :  { %v25_v11 = vsel %vm18_vm0, %v55_v10, 0.0 }
  0xa1   :  { %26 = vadd.xlane.f32.xlu1 %v25_v11 }
  0xa5   :  { %34 = vadd.xlane.f32.xlu1 %v33_v13 }
 0x12e   :  { %v27_v14 = vpop.xlane.xlu1 %26 }
 0x12f   :  { %56 = vlog2.f32 %v27_v14 }
 0x132   :  { %v35_v17 = vpop.xlane.xlu1 %34 }
 0x139   :  { %v57_v15 = vpop.eup %56 }
 0x13a   :  { %v37_v16 = vmul.f32 0.6931472, %v57_v15 }
 0x13c   :  { %v38_v18 = vsub.f32 %v37_v16, %v35_v17 }
 0x13e   :  { %47 = vst.msk [vmem:[%s88_s2] sm:$0xff] %vm46_vm2, %v38_v18 }

</bundles_post_ra>
